<compile_context>
chip_gen: v7x
topology: tpu7x:2x2x1
jax: 0.10.0
libtpu: 0.0.40
codegen_flags: <defaults>
</compile_context>

<pallas_src>
import math

import jax
import jax.numpy as jnp
from jax.experimental import pallas as pl
from jax.experimental.pallas import tpu as pltpu

_LANE = 128
_SUBLANE = 8


def _round_up(x, m):
    return ((x + m - 1) // m) * m


def _cdiv(a, b):
    return (a + b - 1) // b


def _disc_kernel(wc_ref, hpl_ref, hmi_ref, bias_ref, out_ref):
    # wc_ref  : (n_h, 1)   resident across the grid (constant block index)
    # hpl_ref : (TN, n_h)  streamed row tile of positive embeddings
    # hmi_ref : (TN, n_h)  streamed row tile of corrupted embeddings
    # bias_ref: (1,) f32   SMEM scalar
    # out_ref : (TN, 2)    logits tile (ragged last tile is masked on store)
    wc = wc_ref[...]
    bias = bias_ref[0]
    # Keep the (TN, n_h) x (n_h, 1) matvecs on the MXU (2-5x compute slack vs HBM).
    sc1 = jnp.dot(hpl_ref[...], wc, preferred_element_type=jnp.float32) + bias
    sc2 = jnp.dot(hmi_ref[...], wc, preferred_element_type=jnp.float32) + bias
    out_ref[:, 0:1] = sc1.astype(out_ref.dtype)
    out_ref[:, 1:2] = sc2.astype(out_ref.dtype)


def _choose_tile_rows(N, n_h, itemsize, out_itemsize,
                      block_rows, vmem_budget_bytes, max_tile_rows):
    """Pick the row-tile size TN (always a multiple of 8)."""
    n_h_lane = _round_up(n_h, _LANE)  # VMEM tiles are padded to 128 lanes
    if block_rows is not None:
        tn = _round_up(block_rows, _SUBLANE)
        return min(tn, _round_up(N, _SUBLANE))
    # Per-row VMEM footprint: 2 streamed inputs x 2 pipeline buffers (lane-padded
    # feature dim) + double-buffered, lane-padded (TN, 2) -> (TN, 128) output tile.
    per_row = 2 * 2 * n_h_lane * itemsize + 2 * _LANE * out_itemsize
    # Reserve the (double-buffered) resident wc block and ~1 MiB Mosaic scratch.
    reserved = 2 * _round_up(n_h, _SUBLANE) * _LANE * itemsize + (1 << 20)
    budget = max(vmem_budget_bytes - reserved, per_row * _LANE)
    tn = (budget // per_row) // _LANE * _LANE
    tn = max(_LANE, min(max_tile_rows, tn))
    # Never exceed the (sublane-aligned) number of rows actually present.
    tn = min(tn, _round_up(N, _SUBLANE))
    # Megacore balance: for problems big enough to split, force >= 2 roughly
    # equal tiles so both v7x TensorCores get work ("parallel" grid axis).
    if N >= 2 * _LANE:
        k = max(2, _cdiv(N, tn))
        tn = min(tn, max(_LANE, _round_up(_cdiv(N, k), _LANE)))
    return tn


def discriminator_forward(c, h_pl, h_mi, weight, bias,
                          s_bias1=None, s_bias2=None,
                          block_rows=None,
                          vmem_budget_bytes=12 * 1024 * 1024,
                          max_tile_rows=2048):
    """Forward pass of Discriminator.

    c      : (1, n_h)        global summary vector
    h_pl   : (N, n_h)        positive node embeddings
    h_mi   : (N, n_h)        negative (corrupted) node embeddings
    weight : (1, n_h, n_h)   nn.Bilinear weight (out_features = 1)
    bias   : (1,)            nn.Bilinear bias
    returns: (N, 2) logits = concat([sc_1, sc_2], axis=1)
    """
    N, n_h = h_pl.shape
    out_dtype = h_pl.dtype
    itemsize = jnp.dtype(h_pl.dtype).itemsize
    out_itemsize = jnp.dtype(out_dtype).itemsize

    # --- wrapper-side precompute: wc = W @ c^T, shape (n_h, 1) -----------------
    w2d = weight.reshape(n_h, n_h)
    wc = jnp.dot(w2d.astype(jnp.float32), c.astype(jnp.float32).T)  # (n_h, 1) f32
    wc = wc.astype(h_pl.dtype)                                      # streamed-operand dtype
    bias_smem = bias.reshape(1).astype(jnp.float32)

    # --- tile size and grid (no padding; ragged last tile handled by Pallas) ---
    tn = _choose_tile_rows(N, n_h, itemsize, out_itemsize,
                           block_rows, vmem_budget_bytes, max_tile_rows)
    grid = (_cdiv(N, tn),)

    # Explicit Mosaic VMEM limit sized to the actual footprint + headroom.
    n_h_lane = _round_up(n_h, _LANE)
    vmem_needed = (2 * 2 * tn * n_h_lane * itemsize           # double-buffered h tiles
                   + 2 * tn * _LANE * out_itemsize            # double-buffered out tile
                   + 2 * _round_up(n_h, _SUBLANE) * _LANE * itemsize)  # wc
    vmem_limit = int(max(vmem_needed + (2 << 20), 4 << 20))

    cost = pl.CostEstimate(
        flops=4 * N * n_h + 2 * N,
        transcendentals=0,
        bytes_accessed=(2 * N * n_h + n_h) * itemsize
        + 2 * N * out_itemsize + 4,
    )

    out = pl.pallas_call(
        _disc_kernel,
        out_shape=jax.ShapeDtypeStruct((N, 2), out_dtype),
        grid_spec=pl.GridSpec(
            grid=grid,
            in_specs=[
                pl.BlockSpec((n_h, 1), lambda i: (0, 0)),     # wc (resident)
                pl.BlockSpec((tn, n_h), lambda i: (i, 0)),    # h_pl tile (streamed)
                pl.BlockSpec((tn, n_h), lambda i: (i, 0)),    # h_mi tile (streamed)
                pl.BlockSpec(memory_space=pltpu.MemorySpace.SMEM),  # bias scalar
            ],
            out_specs=pl.BlockSpec((tn, 2), lambda i: (i, 0)),
        ),
        compiler_params=pltpu.CompilerParams(
            dimension_semantics=("parallel",),
            vmem_limit_bytes=vmem_limit,
        ),
        cost_estimate=cost,
    )(wc, h_pl, h_mi, bias_smem)

    logits = out
    # Optional additive biases (None in the module's common path); tiny wrapper adds.
    if s_bias1 is not None:
        logits = logits.at[:, 0:1].add(s_bias1)
    if s_bias2 is not None:
        logits = logits.at[:, 1:2].add(s_bias2)
    return logits


def init_discriminator_params(key, n_h):
    """Deterministic xavier_uniform init matching nn.Bilinear(n_h, n_h, 1)."""
    # PyTorch xavier on a (1, n_h, n_h) tensor: fan_in = n_h*n_h, fan_out = n_h
    fan_in = n_h * n_h
    fan_out = n_h
    a = math.sqrt(6.0 / (fan_in + fan_out))
    weight = jax.random.uniform(key, (1, n_h, n_h), jnp.float32,
                                minval=-a, maxval=a)
    bias = jnp.zeros((1,), jnp.float32)
    return weight, bias


def _reference(c, h_pl, h_mi, weight, bias):
    n_h = h_pl.shape[1]
    w2d = weight.reshape(n_h, n_h)
    c_x = jnp.broadcast_to(c, h_pl.shape)
    sc1 = jnp.einsum("ni,ij,nj->n", h_pl, w2d, c_x)[:, None] + bias[0]
    sc2 = jnp.einsum("ni,ij,nj->n", h_mi, w2d, c_x)[:, None] + bias[0]
    return jnp.concatenate([sc1, sc2], axis=1)


if __name__ == "__main__":
    key = jax.random.PRNGKey(0)

    # --- case 1: tiny demo shape (single tile) --------------------------------
    k_w, k_c, k_pl, k_mi, key = jax.random.split(key, 5)
    N, n_h = 8, 32
    weight, bias = init_discriminator_params(k_w, n_h)
    c = jax.random.normal(k_c, (1, n_h), jnp.float32)
    h_pl = jax.random.normal(k_pl, (N, n_h), jnp.float32)
    h_mi = jax.random.normal(k_mi, (N, n_h), jnp.float32)

    logits = jax.block_until_ready(discriminator_forward(c, h_pl, h_mi, weight, bias))
    ref = _reference(c, h_pl, h_mi, weight, bias)
    assert logits.shape == (N, 2)
    assert jnp.allclose(logits, ref, atol=1e-4, rtol=1e-4)

    # --- case 2: ragged, multi-tile grid (exercises the no-pad / cdiv path) ---
    k_w2, k_c2, k_pl2, k_mi2 = jax.random.split(key, 4)
    N2, n_h2 = 300, 64
    weight2, bias2 = init_discriminator_params(k_w2, n_h2)
    c2 = jax.random.normal(k_c2, (1, n_h2), jnp.float32)
    h_pl2 = jax.random.normal(k_pl2, (N2, n_h2), jnp.float32)
    h_mi2 = jax.random.normal(k_mi2, (N2, n_h2), jnp.float32)

    logits2 = jax.block_until_ready(
        discriminator_forward(c2, h_pl2, h_mi2, weight2, bias2))
    ref2 = _reference(c2, h_pl2, h_mi2, weight2, bias2)
    assert logits2.shape == (N2, 2)
    assert jnp.allclose(logits2, ref2, atol=1e-4, rtol=1e-4)

    print("KERNEL_OK")
</pallas_src>

<mosaic_0001>
module attributes {stable_mosaic.version = 11 : i64} {
  func.func @_disc_kernel(%arg0: i32, %arg1: memref<32x1xf32, #tpu.memory_space<vmem>>, %arg2: memref<8x32xf32, #tpu.memory_space<vmem>>, %arg3: memref<8x32xf32, #tpu.memory_space<vmem>>, %arg4: memref<1xf32, #tpu.memory_space<smem>>, %arg5: memref<8x2xf32, #tpu.memory_space<vmem>>) attributes {dimension_semantics = [#tpu.dimension_semantics<parallel>], iteration_bounds = array<i64: 1>, scalar_prefetch = 0 : i64, scratch_operands = 0 : i64, tpu.core_type = #tpu.core_type<tc>, window_params = [{pipeline_mode = #tpu.pipeline_mode<synchronous>, transform_indices = @transform_0, window_bounds = array<i64: 32, 1>}, {transform_indices = @transform_1, window_bounds = array<i64: 8, 32>}, {transform_indices = @transform_2, window_bounds = array<i64: 8, 32>}, {transform_indices = @transform_3, window_bounds = array<i64: 1>}, {transform_indices = @transform_4, window_bounds = array<i64: 8, 2>}]} {
    %c0 = arith.constant 0 : index
    %c0_0 = arith.constant 0 : index
    %0 = vector.load %arg1[%c0, %c0_0] : memref<32x1xf32, #tpu.memory_space<vmem>>, vector<32x1xf32>
    %c0_1 = arith.constant 0 : index
    %1 = memref.load %arg4[%c0_1] : memref<1xf32, #tpu.memory_space<smem>>
    %c0_2 = arith.constant 0 : index
    %c0_3 = arith.constant 0 : index
    %2 = vector.load %arg2[%c0_2, %c0_3] : memref<8x32xf32, #tpu.memory_space<vmem>>, vector<8x32xf32>
    %cst = arith.constant dense<0.000000e+00> : vector<8x1xf32>
    %3 = tpu.matmul %2, %0, %cst {dimension_numbers = #tpu.dot_dimension_numbers<[1], [0], [0], [1], [0, 0, 1, 1], [], []>} : vector<8x32xf32>, vector<32x1xf32>, vector<8x1xf32> -> vector<8x1xf32>
    %4 = vector.broadcast %1 : f32 to vector<8x1xf32>
    %5 = arith.addf %3, %4 : vector<8x1xf32>
    %c0_4 = arith.constant 0 : index
    %c0_5 = arith.constant 0 : index
    %6 = vector.load %arg3[%c0_4, %c0_5] : memref<8x32xf32, #tpu.memory_space<vmem>>, vector<8x32xf32>
    %cst_6 = arith.constant dense<0.000000e+00> : vector<8x1xf32>
    %7 = tpu.matmul %6, %0, %cst_6 {dimension_numbers = #tpu.dot_dimension_numbers<[1], [0], [0], [1], [0, 0, 1, 1], [], []>} : vector<8x32xf32>, vector<32x1xf32>, vector<8x1xf32> -> vector<8x1xf32>
    %8 = vector.broadcast %1 : f32 to vector<8x1xf32>
    %9 = arith.addf %7, %8 : vector<8x1xf32>
    %c0_7 = arith.constant 0 : index
    %c0_8 = arith.constant 0 : index
    %10 = vector.load %arg5[%c0_7, %c0_8] : memref<8x2xf32, #tpu.memory_space<vmem>>, vector<8x1xf32>
    tpu.vector_store %arg5[%c0_7, %c0_8], %5 {strides = array<i32>} : memref<8x2xf32, #tpu.memory_space<vmem>>, vector<8x1xf32>,
    %c0_9 = arith.constant 0 : index
    %c1 = arith.constant 1 : index
    %11 = vector.load %arg5[%c0_9, %c1] : memref<8x2xf32, #tpu.memory_space<vmem>>, vector<8x1xf32>
    tpu.vector_store %arg5[%c0_9, %c1], %9 {strides = array<i32>} : memref<8x2xf32, #tpu.memory_space<vmem>>, vector<8x1xf32>,
    return
  }
  func.func @transform_0(%arg0: i32) -> (i32, i32) {
    %c0_i32 = arith.constant 0 : i32
    %c0_i32_0 = arith.constant 0 : i32
    %c0_i32_1 = arith.constant 0 : i32
    return %c0_i32, %c0_i32_0 : i32, i32
  }
  func.func @transform_1(%arg0: i32) -> (i32, i32) {
    %c0_i32 = arith.constant 0 : i32
    %c0_i32_0 = arith.constant 0 : i32
    return %arg0, %c0_i32 : i32, i32
  }
  func.func @transform_2(%arg0: i32) -> (i32, i32) {
    %c0_i32 = arith.constant 0 : i32
    %c0_i32_0 = arith.constant 0 : i32
    return %arg0, %c0_i32 : i32, i32
  }
  func.func @transform_3(%arg0: i32) -> i32 {
    %c0_i32 = arith.constant 0 : i32
    %c0_i32_0 = arith.constant 0 : i32
    return %c0_i32 : i32
  }
  func.func @transform_4(%arg0: i32) -> (i32, i32) {
    %c0_i32 = arith.constant 0 : i32
    %c0_i32_0 = arith.constant 0 : i32
    return %arg0, %c0_i32 : i32, i32
  }
}

</mosaic_0001>

<bundles_post_ra>
// kernel: tpu_custom_call.1
= control target key start
LH: loop header
LB: loop body
LE: loop exit
PB: predicated region body
PF: predicated region fallthrough
CT: control target
= control target key end

     0   :  { %v235_v0 = vmov 0.0|0.0   ;;  %vm236_vm0 = vmmov 0   ;;  %v237_v4 = vmov 0.0   ;;  %vm25_vm1 = vcmask 261120   ;;  %s238_s28 = smov 1   ;;  %s291_s0 = inlined_call_operand.vmem [shape: f32[32,1], index: 0, kind: input, shape index: {}]   ;;  %s292_s2 = inlined_call_operand.vmem [shape: f32[8,32], index: 2, kind: input, shape index: {}]   ;;  %s293_s1 = inlined_call_operand.vmem [shape: f32[8,32], index: 1, kind: input, shape index: {}]   ;;  %s294_s3 = inlined_call_operand.<no memory space> [shape: f32[1], index: 3, kind: input, shape index: {}]   ;;  %s295_s4 = inlined_call_operand.vmem [shape: f32[8,2], index: 4, kind: output, shape index: {}]  }
   0x1   :  { %225 = vmatprep.subr.bf16.mxu1 %v235_v0  ;;  %v18_v1 = vld [vmem:[%s291_s0] sm:$0xff]  ;;  %v19_v2 = vld [vmem:[%s291_s0 + $0x8] sm:$0xff]  ;;  %v20_v3 = vld [vmem:[%s291_s0 + $0x10] sm:$0xff]  ;;  %216 = vmatprep.mubr.msk.f32.mxu1 %vm236_vm0, %v237_v4  ;;  %v24_v10 = vstv %s294_s3  ;;  %vm173_vm2 = vcmask 7168   ;;  %vm179_vm3 = vcmask 15368  }
   0x2   :  { %v220_v5 = vpack.c.bf16 %v19_v2, %v18_v1  ;;  %v21_v6 = vld [vmem:[%s291_s0 + $0x18] sm:$0xff]  ;;  %219 = vmatprep.subr.bf16.mxu0 %v235_v0  ;;  %205 = vmatprep.mubr.msk.f32.mxu0 %vm236_vm0, %v237_v4  ;;  %v99_v8 = vld [vmem:[%s292_s2] sm:$0xff] }
   0x3   :  { %v223_v7 = vpack.c.bf16 %v21_v6, %v20_v3  ;;  %v23_v9 = vld [vmem:[%s293_s1] sm:$0xff] }
   0x4   :  { %227 = vmatpush3.bf16.msra.mxu1 %v220_v5  ;;  %221 = vmatpush3.bf16.msra.mxu0 %v220_v5 }
   0x5   :  { %228 = vmatprep.subr.bf16.mxu1 %v235_v0  ;;  %222 = vmatprep.subr.bf16.mxu0 %v235_v0 }
   0x8   :  { %230 = vmatpush3.bf16.msra.mxu1 %v223_v7  ;;  %224 = vmatpush3.bf16.msra.mxu0 %v223_v7 }
   0xb   :  { %217 = vmatmul.mubr.msk.f32.vlgmr.msra.gmra.mrb[0].mxu1 %vm25_vm1, %v99_v8  ;;  %206 = vmatmul.mubr.msk.f32.vlgmr.msra.gmra.mrb[0].mxu0 %vm25_vm1, %v23_v9 }
  0xde   :  { %v169_v11 = vpop.f32.mrb[0].mxu1  ;;  %v95_v12 = vpop.f32.mrb[0].mxu0 }
  0xdf   :  { %v170_v13 = vadd.f32 %v169_v11, %v24_v10  ;;  %v218_v14 = vpop.f32.mrb[1].mxu1  ;;  %v96_v15 = vadd.f32 %v95_v12, %v24_v10  ;;  %v207_v16 = vpop.f32.mrb[1].mxu0 }
  0xe1   :  { %176 = vrot.lane.b32.xlu0 %v170_v13, %s238_s28  ;;  %174 = vst.msk [vmem:[%s295_s4] sm:$0xff] %vm173_vm2, %v96_v15 }
 0x153   :  { %v177_v17 = vpop.permute.xlu0 %176 }
 0x154   :  { %180 = vst.msk [vmem:[%s295_s4] sm:$0xff] %vm179_vm3, %v177_v17 }

</bundles_post_ra>
